<compile_context>
chip_gen: v7x
topology: tpu7x:2x2x1
jax: 0.10.0
libtpu: 0.0.40
codegen_flags: <defaults>
</compile_context>

<pallas_src>
import jax
import jax.numpy as jnp
from jax.experimental import pallas as pl
from jax.experimental.pallas import tpu as pltpu


LANES = 128
MAX_ROW_TILE = 2048  # (2048, 128) f32 block = 1 MiB; 3 arrays x 2 bufs = 6 MiB VMEM


def _mix_feature_kernel(x_ref, y_ref, o_ref):
    x = x_ref[...]
    y = y_ref[...]
    sim = jax.nn.sigmoid(x * y)          # EUP transcendental (free slot)
    # sim*x + (1-sim)*y  ==  y + sim*(x-y)
    o_ref[...] = y + sim * (x - y)


def mix_feature(x, y):
    """Fused Mix_feature forward. x, y: same shape, any rank."""
    assert x.shape == y.shape, "Mix_feature requires matching shapes"
    orig_shape = x.shape
    out_dtype = jnp.result_type(x.dtype, y.dtype)
    x = x.astype(out_dtype)
    y = y.astype(out_dtype)

    n = x.size
    if n == 0:
        return jnp.zeros(orig_shape, out_dtype)

    xf = jnp.ravel(x)
    yf = jnp.ravel(y)

    # Pad only when the flat length is not lane-aligned (typical NCHW sizes are).
    rem = n % LANES
    if rem:
        pad = LANES - rem
        xf = jnp.pad(xf, (0, pad))
        yf = jnp.pad(yf, (0, pad))
    rows = xf.size // LANES

    x2 = xf.reshape(rows, LANES)          # reshape of contiguous array: free
    y2 = yf.reshape(rows, LANES)

    if rows <= MAX_ROW_TILE:
        # Single grid cell; block == full array dims (no (8,128) divisibility
        # requirement, no ragged handling, one pipeline step).
        row_tile = rows
        grid = (1,)
    else:
        row_tile = MAX_ROW_TILE
        # Ragged last row-block is masked by Pallas; elementwise compute makes
        # the out-of-bounds region harmless.
        grid = (pl.cdiv(rows, row_tile),)

    spec = pl.BlockSpec((row_tile, LANES), lambda i: (i, 0))

    out2 = pl.pallas_call(
        _mix_feature_kernel,
        out_shape=jax.ShapeDtypeStruct((rows, LANES), out_dtype),
        grid=grid,
        in_specs=[spec, spec],
        out_specs=spec,
        compiler_params=pltpu.CompilerParams(
            dimension_semantics=("parallel",),   # shard grid across TCs (v7x)
        ),
    )(x2, y2)

    if rem:
        return out2.reshape(-1)[:n].reshape(orig_shape)
    return out2.reshape(orig_shape)


def _reference(x, y):
    total = x * y
    sim = jax.nn.sigmoid(total)
    return sim * x + (1.0 - sim) * y


if __name__ == "__main__":
    key = jax.random.PRNGKey(0)
    kx, ky = jax.random.split(key)

    # NCHW, small shapes: batch=2, channels=4, spatial=16
    x = jax.random.normal(kx, (2, 4, 16, 16), dtype=jnp.float32)
    y = jax.random.normal(ky, (2, 4, 16, 16), dtype=jnp.float32)

    out = mix_feature(x, y)
    jax.block_until_ready(out)

    ref = _reference(x, y)
    assert out.shape == x.shape and out.dtype == x.dtype
    assert jnp.allclose(out, ref, atol=2e-6, rtol=1e-5), "mismatch vs reference"

    # Also exercise the lane-unaligned path (pad + slice branch).
    xu = jax.random.normal(kx, (3, 5, 7, 11), dtype=jnp.float32)
    yu = jax.random.normal(ky, (3, 5, 7, 11), dtype=jnp.float32)
    outu = mix_feature(xu, yu)
    jax.block_until_ready(outu)
    assert outu.shape == xu.shape
    assert jnp.allclose(outu, _reference(xu, yu), atol=2e-6, rtol=1e-5)

    print("KERNEL_OK")
</pallas_src>

<mosaic_0001>
module attributes {stable_mosaic.version = 11 : i64} {
  func.func @_mix_feature_kernel(%arg0: i32, %arg1: memref<16x128xf32, #tpu.memory_space<vmem>>, %arg2: memref<16x128xf32, #tpu.memory_space<vmem>>, %arg3: memref<16x128xf32, #tpu.memory_space<vmem>>) attributes {dimension_semantics = [#tpu.dimension_semantics<parallel>], iteration_bounds = array<i64: 1>, scalar_prefetch = 0 : i64, scratch_operands = 0 : i64, tpu.core_type = #tpu.core_type<tc>, window_params = [{transform_indices = @transform_0, window_bounds = array<i64: 16, 128>}, {transform_indices = @transform_1, window_bounds = array<i64: 16, 128>}, {transform_indices = @transform_2, window_bounds = array<i64: 16, 128>}]} {
    %c0 = arith.constant 0 : index
    %c0_0 = arith.constant 0 : index
    %0 = vector.load %arg1[%c0, %c0_0] : memref<16x128xf32, #tpu.memory_space<vmem>>, vector<16x128xf32>
    %c0_1 = arith.constant 0 : index
    %c0_2 = arith.constant 0 : index
    %1 = vector.load %arg2[%c0_1, %c0_2] : memref<16x128xf32, #tpu.memory_space<vmem>>, vector<16x128xf32>
    %2 = arith.mulf %0, %1 : vector<16x128xf32>
    %3 = arith.negf %2 : vector<16x128xf32>
    %4 = math.exp %3 : vector<16x128xf32>
    %cst = arith.constant 1.000000e+00 : f32
    %5 = vector.broadcast %cst : f32 to vector<16x128xf32>
    %6 = arith.addf %5, %4 : vector<16x128xf32>
    %7 = arith.divf %5, %6 : vector<16x128xf32>
    %8 = arith.subf %0, %1 : vector<16x128xf32>
    %9 = arith.mulf %7, %8 : vector<16x128xf32>
    %10 = arith.addf %1, %9 : vector<16x128xf32>
    %c0_3 = arith.constant 0 : index
    %c0_4 = arith.constant 0 : index
    %11 = vector.load %arg3[%c0_3, %c0_4] : memref<16x128xf32, #tpu.memory_space<vmem>>, vector<16x128xf32>
    tpu.vector_store %arg3[%c0_3, %c0_4], %10 {strides = array<i32>} : memref<16x128xf32, #tpu.memory_space<vmem>>, vector<16x128xf32>,
    return
  }
  func.func @transform_0(%arg0: i32) -> (i32, i32) {
    %c0_i32 = arith.constant 0 : i32
    %c0_i32_0 = arith.constant 0 : i32
    return %arg0, %c0_i32 : i32, i32
  }
  func.func @transform_1(%arg0: i32) -> (i32, i32) {
    %c0_i32 = arith.constant 0 : i32
    %c0_i32_0 = arith.constant 0 : i32
    return %arg0, %c0_i32 : i32, i32
  }
  func.func @transform_2(%arg0: i32) -> (i32, i32) {
    %c0_i32 = arith.constant 0 : i32
    %c0_i32_0 = arith.constant 0 : i32
    return %arg0, %c0_i32 : i32, i32
  }
}

</mosaic_0001>

<bundles_post_ra>
// kernel: tpu_custom_call.1
= control target key start
LH: loop header
LB: loop body
LE: loop exit
PB: predicated region body
PF: predicated region fallthrough
CT: control target
= control target key end

     0   :  { %7 = vsyncpa [#allocation3], 0  ;;  %s236_s0 = inlined_call_operand.hbm [shape: f32[16,128], index: 0, kind: input, shape index: {}]   ;;  %s237_s1 = inlined_call_operand.hbm [shape: f32[16,128], index: 1, kind: input, shape index: {}]   ;;  %s238_s2 = inlined_call_operand.hbm [shape: f32[16,128], index: 2, kind: output, shape index: {}]  }
   0x1   :  { %8 = vsyncpa [#allocation6], 0 }
   0x2   :  { %9 = vsyncpa [#allocation4], 0  ;;  %s171_s9 = smov [#allocation2]   ;;  %s99_s13 = scalar_lea.hbm %s236_s0, 256 }
   0x3   :  { %s15_s10 = sshll.u32 %s171_s9, 4  ;;  %p100_p0 = scmp.ne.s32.totalorder %s236_s0, %s99_s13  ;;  %s16_s10 = int_to_ptr.vmem [resolvable:$true] %s15_s10 }
   0x4   :  { %p103_p1 = scmp.lt.u32.totalorder %s99_s13, %s236_s0 }
   0x6   :  { %p105_p2 = pnand %p103_p1, %p100_p0 }
   0x8   :  { %108 = shalt.err (!%p105_p2)
}
   0x9   :  { %s109_s18 = scalar_lea.vmem %s16_s10, 256  ;;  %p114_p4 = scmp.lt.s32.totalorder %s16_s10, %s16_s10 }
   0xa   :  { %p110_p3 = scmp.ne.s32.totalorder %s16_s10, %s109_s18  ;;  %p115_p5 = scmp.lt.s32.totalorder %s109_s18, %s109_s18 }
   0xc   :  { %p116_p6 = por %p115_p5, %p114_p4 }
   0xe   :  { %p117_p7 = pnand %p116_p6, %p110_p3 }
  0x10   :  { %120 = shalt.err (!%p117_p7)
}
  0x11   :  { %s172_s19 = smov 128   ;;  %s173_s20 = smov 8  }
  0x12   :  { %21 = dma.hbm_to_vmem [thread:$0]  %s236_s0, 256, %s16_s10, [#allocation3], %s172_s19, %s172_s19, %s173_s20  }
  0x13   :  { %s174_s23 = smov [#allocation5]   ;;  %s121_s27 = scalar_lea.hbm %s237_s1, 256 }
  0x14   :  { %s27_s24 = sshll.u32 %s174_s23, 4  ;;  %p122_p8 = scmp.ne.s32.totalorder %s237_s1, %s121_s27  ;;  %s28_s24 = int_to_ptr.vmem [resolvable:$true] %s27_s24 }
  0x15   :  { %p125_p9 = scmp.lt.u32.totalorder %s121_s27, %s237_s1 }
  0x17   :  { %p127_p10 = pnand %p125_p9, %p122_p8 }
  0x19   :  { %130 = shalt.err (!%p127_p10)
}
  0x1a   :  { %s131_s4 = scalar_lea.vmem %s28_s24, 256  ;;  %p136_p12 = scmp.lt.s32.totalorder %s28_s24, %s28_s24 }
  0x1b   :  { %p132_p11 = scmp.ne.s32.totalorder %s28_s24, %s131_s4  ;;  %p137_p13 = scmp.lt.s32.totalorder %s131_s4, %s131_s4 }
  0x1d   :  { %p138_p0 = por %p137_p13, %p136_p12 }
  0x1f   :  { %p139_p1 = pnand %p138_p0, %p132_p11 }
  0x21   :  { %142 = shalt.err (!%p139_p1)
}
  0x22   :  { %33 = dma.hbm_to_vmem [thread:$0]  %s237_s1, 256, %s28_s24, [#allocation6], %s172_s19, %s172_s19, %s173_s20  }
  0x23   :  { %165 = dma.done.wait [#allocation3], 256  }
  0x24   :  { %166 = vsyncadd [#allocation3], 4294967040 }
  0x25   :  { %167 = dma.done.wait [#allocation6], 256  }
  0x26   :  { %168 = vsyncadd [#allocation6], 4294967040  ;;  %v40_v0 = vld [vmem:[#allocation2] sm:$0xff]  ;;  %v42_v1 = vld [vmem:[#allocation5] sm:$0xff]  ;;  %s175_s1 = smov [#allocation7]  }
  0x27   :  { %v41_v2 = vld [vmem:[#allocation2 + $0x8] sm:$0xff]  ;;  %v44_v3 = vmul.f32 %v42_v1, %v40_v0  ;;  %v43_v4 = vld [vmem:[#allocation5 + $0x8] sm:$0xff]  ;;  %v58_v12 = vsub.f32 %v40_v0, %v42_v1  ;;  %s71_s6 = sshll.u32 %s175_s1, 4  ;;  %s72_s6 = int_to_ptr.vmem [resolvable:$true] %s71_s6 }
  0x28   :  { %v45_v5 = vmul.f32 %v43_v4, %v41_v2  ;;  %v59_v13 = vsub.f32 %v41_v2, %v43_v4  ;;  %s143_s7 = scalar_lea.vmem %s72_s6, 256  ;;  %p148_p3 = scmp.lt.s32.totalorder %s72_s6, %s72_s6 }
  0x29   :  { %v84_v6 = vmul.f32 -1.442695, %v44_v3  ;;  %p144_p2 = scmp.ne.s32.totalorder %s72_s6, %s143_s7  ;;  %p149_p4 = scmp.lt.s32.totalorder %s143_s7, %s143_s7 }
  0x2a   :  { %v85_v7 = vmul.f32 -1.442695, %v45_v5 }
  0x2b   :  { %91 = vpow2.f32 %v84_v6  ;;  %p150_p5 = por %p149_p4, %p148_p3 }
  0x2c   :  { %93 = vpow2.f32 %v85_v7 }
  0x2d   :  { %p151_p6 = pnand %p150_p5, %p144_p2 }
  0x35   :  { %v92_v8 = vpop.eup %91 }
  0x36   :  { %v94_v9 = vpop.eup %93  ;;  %v52_v10 = vadd.f32 1.0, %v92_v8 }
  0x37   :  { %v53_v11 = vadd.f32 1.0, %v94_v9 }
  0x38   :  { %95 = vrcp.f32 %v52_v10 }
  0x39   :  { %97 = vrcp.f32 %v53_v11 }
  0x42   :  { %v96_v14 = vpop.eup %95 }
  0x43   :  { %v98_v15 = vpop.eup %97  ;;  %v60_v16 = vmul.f32 %v96_v14, %v58_v12 }
  0x44   :  { %v61_v17 = vmul.f32 %v98_v15, %v59_v13 }
  0x45   :  { %v62_v18 = vadd.f32 %v60_v16, %v42_v1 }
  0x46   :  { %v63_v19 = vadd.f32 %v61_v17, %v43_v4 }
  0x47   :  { %64 = vst [vmem:[#allocation7] sm:$0xff] %v62_v18 }
  0x48   :  { %65 = vst [vmem:[#allocation7 + $0x8] sm:$0xff] %v63_v19 }
  0x49   :  { %154 = shalt.err (!%p151_p6)
}
  0x4a   :  { %s155_s10 = scalar_lea.hbm %s238_s2, 256 }
  0x4b   :  { %p156_p7 = scmp.ne.s32.totalorder %s238_s2, %s155_s10  ;;  %p159_p8 = scmp.lt.u32.totalorder %s155_s10, %s238_s2 }
  0x4d   :  { %p161_p9 = pnand %p159_p8, %p156_p7 }
  0x4f   :  { %164 = shalt.err (!%p161_p9)
}
  0x50   :  { %77 = dma.vmem_to_hbm [thread:$0]  %s72_s6, 256, %s238_s2, [#allocation4], %s172_s19, %s172_s19, %s173_s20  }
  0x51   :  { %169 = dma.done.wait [#allocation4], 256  }
  0x52   :  { %170 = vsyncadd [#allocation4], 4294967040 }
  0x53   :  { %81 = vsyncpa [#allocation3], 1 }
  0x54   :  { %82 = vsyncpa [#allocation6], 1 }
  0x55   :  { %83 = vsyncpa [#allocation4], 1 }

</bundles_post_ra>
